<compile_context>
chip_gen: v5e
topology: v5e:2x2
jax: 0.10.0
libtpu: 0.0.40
codegen_flags: <defaults>
</compile_context>

<pallas_src>
import functools
import math

import jax
import jax.numpy as jnp
from jax import lax
from jax.experimental import pallas as pl
from jax.experimental.pallas import tpu as pltpu


def _round_up(x, m):
    return ((x + m - 1) // m) * m


def _label_smoothing_kernel(logp_ref, tgt_ref, out_ref, acc_c, acc_n, *,
                            smoothing_value, confidence, padding_idx,
                            block_rows):
    # Zero this core's accumulators at the start of its row range.
    @pl.when(pl.program_id(1) == 0)
    def _():
        acc_c[...] = jnp.zeros_like(acc_c)
        acc_n[...] = jnp.zeros_like(acc_n)

    V = logp_ref.shape[-1]
    nslab = block_rows // 8  # static

    def slab_body(g, carry):
        r0 = pl.multiple_of(g * 8, 8)
        logp = logp_ref[pl.ds(r0, 8), :].astype(jnp.float32)      # (8, V)
        tgt = tgt_ref[pl.ds(r0, 8), :]                            # (8, 1) int32

        valid = tgt != padding_idx                                # (8, 1)
        # Invalid rows get a target of -1 so they never match any lane.
        tgt_m = jnp.where(valid, tgt, -1)

        ids = lax.broadcasted_iota(jnp.int32, (8, V), 1)
        is_tgt = ids == tgt_m                                     # (8, V)

        s_tgt = jnp.sum(jnp.where(is_tgt, logp, 0.0), axis=-1, keepdims=True)
        s_all = jnp.sum(logp, axis=-1, keepdims=True)
        s_pad = logp[:, padding_idx:padding_idx + 1]              # static lane slice

        data = (-smoothing_value) * (s_all - s_tgt - s_pad)
        if confidence > 0.0:   # trace-time guard (label_smoothing == 1.0 case)
            data = data - confidence * s_tgt

        validf = valid.astype(jnp.float32)
        acc_c[...] += validf * data                               # (8, 1)
        acc_n[...] += validf
        return carry

    lax.fori_loop(0, nslab, slab_body, 0)

    # Flush once per core: lane-dense (8,128) block, col 0 = contrib, col 1 = count.
    @pl.when(pl.program_id(1) == pl.num_programs(1) - 1)
    def _():
        lane = lax.broadcasted_iota(jnp.int32, (8, 128), 1)
        blk = jnp.where(lane == 0, acc_c[...], 0.0)
        blk = jnp.where(lane == 1, acc_n[...], blk)
        out_ref[...] = blk


def label_smoothing_kl(log_probs, target, *, size, padding_idx,
                       label_smoothing, block_rows=None, num_row_groups=2):
    """Pallas implementation of LabelSmoothing.forward (returns a 0-d scalar)."""
    N, V = log_probs.shape
    assert 0.0 < label_smoothing <= 1.0
    assert target.shape == (N, 1)
    target = target.astype(jnp.int32)

    sv = label_smoothing / (size - 2)
    conf = 1.0 - label_smoothing
    log_sv = math.log(sv)
    # Per-valid-row constant part of sum_v prob*log(prob); target term only if conf > 0.
    row_const = sv * (V - 2) * log_sv
    if conf > 0.0:
        row_const += conf * math.log(conf)
    # NOTE: targets >= V are out of range for the PyTorch scatter_ (it would
    # raise); here they silently fall back to smoothing-only rows.

    G = max(1, int(num_row_groups))   # 2 -> uses both TensorCores on v7x

    # --- generation-aware VMEM budget / tile sizing ---
    try:
        vmem_cap = int(pltpu.get_tpu_info().vmem_capacity_bytes)
    except Exception:                                   # pragma: no cover
        vmem_cap = 64 << 20
    vmem_limit = int(min((vmem_cap * 3) // 4, 112 << 20))

    itemsize = jnp.dtype(log_probs.dtype).itemsize
    row_bytes = V * itemsize
    if block_rows is None:
        slab_reserve = 6 * 8 * V * 4        # f32 temporaries of one 8-row slab
        misc_reserve = 4 << 20              # target tile, outputs, accumulators
        tile_budget = max((vmem_limit - slab_reserve - misc_reserve) // 2,
                          8 * row_bytes)
        block_rows = max(8, min(tile_budget // row_bytes, 2048))
    block_rows = max(8, (int(block_rows) // 8) * 8)
    block_rows = min(block_rows, _round_up(-(-N // G), 8))

    steps = -(-N // (G * block_rows))       # grid steps per row group
    padded_N = G * steps * block_rows
    if padded_N != N:
        # Padded rows get target == padding_idx -> contribute exactly 0.
        log_probs = jnp.pad(log_probs, ((0, padded_N - N), (0, 0)))
        target = jnp.pad(target, ((0, padded_N - N), (0, 0)),
                         constant_values=padding_idx)

    kernel = functools.partial(
        _label_smoothing_kernel,
        smoothing_value=sv,
        confidence=conf,
        padding_idx=padding_idx,
        block_rows=block_rows,
    )

    out = pl.pallas_call(
        kernel,
        out_shape=jax.ShapeDtypeStruct((G * 8, 128), jnp.float32),
        grid_spec=pltpu.PrefetchScalarGridSpec(
            num_scalar_prefetch=0,
            grid=(G, steps),
            in_specs=[
                pl.BlockSpec((block_rows, V), lambda c, i: (c * steps + i, 0)),
                pl.BlockSpec((block_rows, 1), lambda c, i: (c * steps + i, 0)),
            ],
            out_specs=pl.BlockSpec((8, 128), lambda c, i: (c, 0)),
            scratch_shapes=[pltpu.VMEM((8, 1), jnp.float32),   # per-row contrib acc
                            pltpu.VMEM((8, 1), jnp.float32)],  # valid-row count acc
        ),
        compiler_params=pltpu.CompilerParams(
            dimension_semantics=("parallel", "arbitrary"),
            vmem_limit_bytes=vmem_limit),
    )(log_probs, target)

    contrib = jnp.sum(out[:, 0])
    count = jnp.sum(out[:, 1])
    return count * jnp.float32(row_const) + contrib


def _reference(log_probs, target, *, size, padding_idx, label_smoothing):
    """Pure-JAX mirror of the PyTorch forward, for verification."""
    N, V = log_probs.shape
    sv = label_smoothing / (size - 2)
    conf = 1.0 - label_smoothing
    one_hot = jnp.full((V,), sv, jnp.float32).at[padding_idx].set(0.0)
    prob = jnp.tile(one_hot[None, :], (N, 1))
    prob = prob.at[jnp.arange(N), target[:, 0]].set(conf)
    prob = jnp.where(target == padding_idx, 0.0, prob)
    term = jnp.where(prob > 0.0,
                     prob * (jnp.log(jnp.maximum(prob, 1e-30)) - log_probs),
                     0.0)
    return jnp.sum(term)


if __name__ == "__main__":
    bsz, seq, size = 2, 8, 32
    padding_idx, label_smoothing = 0, 0.1
    N = bsz * seq  # bsz*seq_len rows, as in the PyTorch forward

    key = jax.random.PRNGKey(0)
    k1, k2, k3, k4 = jax.random.split(key, 4)

    # --- case 1: regular vocab (V == size) ---
    logits = jax.random.normal(k1, (N, size), jnp.float32)
    log_probs = jax.nn.log_softmax(logits, axis=-1)      # kl_div expects log-probs
    target = jax.random.randint(k2, (N, 1), 0, size, jnp.int32)
    # ensure some padded positions exercise the masked_fill path
    target = target.at[0, 0].set(padding_idx).at[5, 0].set(padding_idx)

    loss = label_smoothing_kl(log_probs, target, size=size,
                              padding_idx=padding_idx,
                              label_smoothing=label_smoothing)
    loss = jax.block_until_ready(loss)
    ref = _reference(log_probs, target, size=size, padding_idx=padding_idx,
                     label_smoothing=label_smoothing)
    assert jnp.allclose(loss, ref, rtol=1e-5, atol=1e-5), (loss, ref)

    # --- case 2: extended vocab (V > size, copy-mechanism branch) ---
    V_ext = size + 16
    logits_ext = jax.random.normal(k3, (N, V_ext), jnp.float32)
    log_probs_ext = jax.nn.log_softmax(logits_ext, axis=-1)
    target_ext = jax.random.randint(k4, (N, 1), 0, V_ext, jnp.int32)
    target_ext = target_ext.at[3, 0].set(padding_idx)

    loss_ext = label_smoothing_kl(log_probs_ext, target_ext, size=size,
                                  padding_idx=padding_idx,
                                  label_smoothing=label_smoothing)
    loss_ext = jax.block_until_ready(loss_ext)
    ref_ext = _reference(log_probs_ext, target_ext, size=size,
                         padding_idx=padding_idx,
                         label_smoothing=label_smoothing)
    assert jnp.allclose(loss_ext, ref_ext, rtol=1e-5, atol=1e-5), (loss_ext, ref_ext)

    # --- case 3: bf16 log-probs (halved HBM traffic path) ---
    loss_bf16 = label_smoothing_kl(log_probs.astype(jnp.bfloat16), target,
                                   size=size, padding_idx=padding_idx,
                                   label_smoothing=label_smoothing)
    loss_bf16 = jax.block_until_ready(loss_bf16)
    assert jnp.allclose(loss_bf16, ref, rtol=2e-2, atol=2e-2), (loss_bf16, ref)

    print("KERNEL_OK")
</pallas_src>

<mosaic_0001>
module attributes {stable_mosaic.version = 11 : i64} {
  func.func @_label_smoothing_kernel(%arg0: i32, %arg1: i32, %arg2: memref<8x32xf32, #tpu.memory_space<vmem>>, %arg3: memref<8x1xi32, #tpu.memory_space<vmem>>, %arg4: memref<8x128xf32, #tpu.memory_space<vmem>>, %arg5: memref<8x1xf32, #tpu.memory_space<vmem>>, %arg6: memref<8x1xf32, #tpu.memory_space<vmem>>) attributes {dimension_semantics = [#tpu.dimension_semantics<parallel>, #tpu.dimension_semantics<arbitrary>], iteration_bounds = array<i64: 2, 1>, scalar_prefetch = 0 : i64, scratch_operands = 2 : i64, tpu.core_type = #tpu.core_type<tc>, window_params = [{transform_indices = @transform_0, window_bounds = array<i64: 8, 32>}, {transform_indices = @transform_1, window_bounds = array<i64: 8, 1>}, {transform_indices = @transform_2, window_bounds = array<i64: 8, 128>}]} {
    %c0_i32 = arith.constant 0 : i32
    %0 = arith.cmpi eq, %arg1, %c0_i32 : i32
    %1 = arith.extui %0 : i1 to i32
    %c0_i32_0 = arith.constant 0 : i32
    %2 = arith.cmpi ne, %1, %c0_i32_0 : i32
    scf.if %2 {
      %cst_18 = arith.constant 0.000000e+00 : f32
      %42 = vector.broadcast %cst_18 : f32 to vector<8x1xf32>
      %c0_19 = arith.constant 0 : index
      %c0_20 = arith.constant 0 : index
      %43 = vector.load %arg5[%c0_19, %c0_20] : memref<8x1xf32, #tpu.memory_space<vmem>>, vector<8x1xf32>
      tpu.vector_store %arg5[%c0_19, %c0_20], %42 {strides = array<i32>} : memref<8x1xf32, #tpu.memory_space<vmem>>, vector<8x1xf32>,
      %cst_21 = arith.constant 0.000000e+00 : f32
      %44 = vector.broadcast %cst_21 : f32 to vector<8x1xf32>
      %c0_22 = arith.constant 0 : index
      %c0_23 = arith.constant 0 : index
      %45 = vector.load %arg6[%c0_22, %c0_23] : memref<8x1xf32, #tpu.memory_space<vmem>>, vector<8x1xf32>
      tpu.vector_store %arg6[%c0_22, %c0_23], %44 {strides = array<i32>} : memref<8x1xf32, #tpu.memory_space<vmem>>, vector<8x1xf32>,
    } else {
    }
    %c0_i32_1 = arith.constant 0 : i32
    %c8_i32 = arith.constant 8 : i32
    %3 = arith.muli %c0_i32_1, %c8_i32 : i32
    %4 = tpu.assume_multiple %3, 8 : i32
    %5 = arith.index_cast %4 : i32 to index
    %c0 = arith.constant 0 : index
    %6 = vector.load %arg2[%5, %c0] : memref<8x32xf32, #tpu.memory_space<vmem>>, vector<8x32xf32>
    %7 = arith.index_cast %4 : i32 to index
    %c0_2 = arith.constant 0 : index
    %8 = vector.load %arg3[%7, %c0_2] : memref<8x1xi32, #tpu.memory_space<vmem>>, vector<8x1xi32>
    %c0_i32_3 = arith.constant 0 : i32
    %9 = vector.broadcast %c0_i32_3 : i32 to vector<8x1xi32>
    %10 = arith.cmpi ne, %8, %9 : vector<8x1xi32>
    %c-1_i32 = arith.constant -1 : i32
    %11 = vector.broadcast %c-1_i32 : i32 to vector<8x1xi32>
    %12 = arith.select %10, %8, %11 : vector<8x1xi1>, vector<8x1xi32>
    %13 = tpu.iota {dimensions = array<i32: 1>} : vector<8x32xi32>
    %14 = vector.broadcast %12 : vector<8x1xi32> to vector<8x32xi32>
    %15 = arith.cmpi eq, %13, %14 : vector<8x32xi32>
    %cst = arith.constant 0.000000e+00 : f32
    %16 = vector.broadcast %cst : f32 to vector<8x32xf32>
    %17 = arith.select %15, %6, %16 : vector<8x32xi1>, vector<8x32xf32>
    %cst_4 = arith.constant dense<0.000000e+00> : vector<8xf32>
    %18 = vector.multi_reduction <add>, %17, %cst_4 [1] : vector<8x32xf32> to vector<8xf32>
    %19 = vector.shape_cast %18 : vector<8xf32> to vector<8x1xf32>
    %cst_5 = arith.constant dense<0.000000e+00> : vector<8xf32>
    %20 = vector.multi_reduction <add>, %6, %cst_5 [1] : vector<8x32xf32> to vector<8xf32>
    %21 = vector.shape_cast %20 : vector<8xf32> to vector<8x1xf32>
    %22 = vector.extract_strided_slice %6 {offsets = [0, 0], sizes = [8, 1], strides = [1, 1]} : vector<8x32xf32> to vector<8x1xf32>
    %23 = arith.subf %21, %19 : vector<8x1xf32>
    %24 = arith.subf %23, %22 : vector<8x1xf32>
    %cst_6 = arith.constant -0.00333333341 : f32
    %25 = vector.broadcast %cst_6 : f32 to vector<8x1xf32>
    %26 = arith.mulf %25, %24 : vector<8x1xf32>
    %cst_7 = arith.constant 0.899999976 : f32
    %27 = vector.broadcast %cst_7 : f32 to vector<8x1xf32>
    %28 = arith.mulf %27, %19 : vector<8x1xf32>
    %29 = arith.subf %26, %28 : vector<8x1xf32>
    %30 = arith.extui %10 : vector<8x1xi1> to vector<8x1xi32>
    %31 = arith.sitofp %30 : vector<8x1xi32> to vector<8x1xf32>
    %c0_8 = arith.constant 0 : index
    %c0_9 = arith.constant 0 : index
    %32 = vector.load %arg5[%c0_8, %c0_9] : memref<8x1xf32, #tpu.memory_space<vmem>>, vector<8x1xf32>
    %33 = arith.mulf %31, %29 : vector<8x1xf32>
    %34 = arith.addf %32, %33 : vector<8x1xf32>
    %c0_10 = arith.constant 0 : index
    %c0_11 = arith.constant 0 : index
    %35 = vector.load %arg5[%c0_10, %c0_11] : memref<8x1xf32, #tpu.memory_space<vmem>>, vector<8x1xf32>
    tpu.vector_store %arg5[%c0_10, %c0_11], %34 {strides = array<i32>} : memref<8x1xf32, #tpu.memory_space<vmem>>, vector<8x1xf32>,
    %c0_12 = arith.constant 0 : index
    %c0_13 = arith.constant 0 : index
    %36 = vector.load %arg6[%c0_12, %c0_13] : memref<8x1xf32, #tpu.memory_space<vmem>>, vector<8x1xf32>
    %37 = arith.addf %36, %31 : vector<8x1xf32>
    %c0_14 = arith.constant 0 : index
    %c0_15 = arith.constant 0 : index
    %38 = vector.load %arg6[%c0_14, %c0_15] : memref<8x1xf32, #tpu.memory_space<vmem>>, vector<8x1xf32>
    tpu.vector_store %arg6[%c0_14, %c0_15], %37 {strides = array<i32>} : memref<8x1xf32, #tpu.memory_space<vmem>>, vector<8x1xf32>,
    %c1_i32 = arith.constant 1 : i32
    %c0_i32_16 = arith.constant 0 : i32
    %39 = arith.cmpi eq, %arg1, %c0_i32_16 : i32
    %40 = arith.extui %39 : i1 to i32
    %c0_i32_17 = arith.constant 0 : i32
    %41 = arith.cmpi ne, %40, %c0_i32_17 : i32
    scf.if %41 {
      %42 = tpu.iota {dimensions = array<i32: 1>} : vector<8x128xi32>
      %c0_i32_18 = arith.constant 0 : i32
      %43 = vector.broadcast %c0_i32_18 : i32 to vector<8x128xi32>
      %44 = arith.cmpi eq, %42, %43 : vector<8x128xi32>
      %c0_19 = arith.constant 0 : index
      %c0_20 = arith.constant 0 : index
      %45 = vector.load %arg5[%c0_19, %c0_20] : memref<8x1xf32, #tpu.memory_space<vmem>>, vector<8x1xf32>
      %cst_21 = arith.constant 0.000000e+00 : f32
      %46 = vector.shape_cast %45 : vector<8x1xf32> to vector<8x1xf32>
      %47 = vector.broadcast %46 : vector<8x1xf32> to vector<8x128xf32>
      %48 = vector.broadcast %cst_21 : f32 to vector<8x128xf32>
      %49 = arith.select %44, %47, %48 : vector<8x128xi1>, vector<8x128xf32>
      %c1_i32_22 = arith.constant 1 : i32
      %50 = vector.broadcast %c1_i32_22 : i32 to vector<8x128xi32>
      %51 = arith.cmpi eq, %42, %50 : vector<8x128xi32>
      %c0_23 = arith.constant 0 : index
      %c0_24 = arith.constant 0 : index
      %52 = vector.load %arg6[%c0_23, %c0_24] : memref<8x1xf32, #tpu.memory_space<vmem>>, vector<8x1xf32>
      %53 = vector.shape_cast %52 : vector<8x1xf32> to vector<8x1xf32>
      %54 = vector.broadcast %53 : vector<8x1xf32> to vector<8x128xf32>
      %55 = arith.select %51, %54, %49 : vector<8x128xi1>, vector<8x128xf32>
      %c0_25 = arith.constant 0 : index
      %c0_26 = arith.constant 0 : index
      %56 = vector.load %arg4[%c0_25, %c0_26] : memref<8x128xf32, #tpu.memory_space<vmem>>, vector<8x128xf32>
      tpu.vector_store %arg4[%c0_25, %c0_26], %55 {strides = array<i32>} : memref<8x128xf32, #tpu.memory_space<vmem>>, vector<8x128xf32>,
    } else {
    }
    return
  }
  func.func @transform_0(%arg0: i32, %arg1: i32) -> (i32, i32) {
    %c1_i32 = arith.constant 1 : i32
    %0 = arith.muli %arg0, %c1_i32 : i32
    %1 = arith.addi %0, %arg1 : i32
    %c0_i32 = arith.constant 0 : i32
    %c0_i32_0 = arith.constant 0 : i32
    return %1, %c0_i32 : i32, i32
  }
  func.func @transform_1(%arg0: i32, %arg1: i32) -> (i32, i32) {
    %c1_i32 = arith.constant 1 : i32
    %0 = arith.muli %arg0, %c1_i32 : i32
    %1 = arith.addi %0, %arg1 : i32
    %c0_i32 = arith.constant 0 : i32
    %c0_i32_0 = arith.constant 0 : i32
    return %1, %c0_i32 : i32, i32
  }
  func.func @transform_2(%arg0: i32, %arg1: i32) -> (i32, i32) {
    %c0_i32 = arith.constant 0 : i32
    %c0_i32_0 = arith.constant 0 : i32
    return %arg0, %c0_i32 : i32, i32
  }
}

</mosaic_0001>

<bundles_post_ra>
// kernel: tpu_custom_call.1
= control target key start
LH: loop header
LB: loop body
LE: loop exit
PB: predicated region body
PF: predicated region fallthrough
CT: control target
= control target key end

     0   :  { %7 = vsyncpa [#allocation5], 0  ;;  %s611_s0 = inlined_call_operand.vmem [shape: f32[16,32], index: 0, kind: input, shape index: {}]   ;;  %s612_s1 = inlined_call_operand.vmem [shape: s32[16,1], index: 1, kind: input, shape index: {}]   ;;  %s613_s2 = inlined_call_operand.hbm [shape: f32[16,128], index: 2, kind: output, shape index: {}]  }
   0x1   :  { %9 = vsyncpa [#allocation5 + $0x1], 0  ;;  %s507_s9 = smov 0   ;;  %s509_s10 = smov 0  }
   0x2   :  { %s511_s11 = smov 0   ;;  %s513_s12 = smov 0  }
   0x3   :  { %s515_s13 = smov 0   ;;  %s517_s14 = smov 0  }
   0x4 LB: > { %s337_s15 = sadd.s32 4294967295, %s488_s14   ;;  %s338_s16 = sadd.s32 4294967294, %s488_s14   ;;  %s488_s14 = sphi %s517_s14, %s15_s14   ;;  %s484_s13 = sphi %s515_s13, %s620_s13   ;;  %s480_s12 = sphi %s513_s12, %s619_s12   ;;  %s476_s11 = sphi %s511_s11, %s618_s11   ;;  %s472_s10 = sphi %s509_s10, %s617_s10   ;;  %s468_s9 = sphi %s507_s9, %s616_s9  }
   0x5   : > { %s27_s17 = sadd.s32 1, %s484_s13  ;;  %s90_s18 = sadd.s32 1, %s476_s11 }
   0x6   : > { %p29_p0 = scmp.ge.s32.totalorder %s27_s17, 2  ;;  %p100_p1 = scmp.ne.s32.totalorder %s476_s11, %s472_s10 }
   0x7   : > { %p101_p2 = scmp.eq.s32.totalorder %s337_s15, 1  ;;  %p106_p3 = scmp.ne.s32.totalorder %s472_s10, %s468_s9 }
   0x8   : > { %s622_s17 = smov (%p29_p0, %s27_s17), 0  ;;  %p107_p5 = scmp.eq.s32.totalorder %s338_s16, 1 }
   0x9   : > { %p547_p4 = por %p101_p2, %p100_p1  ;;  %s87_s20 = ssub.s32 %s484_s13, %s622_s17 }
   0xa   : > { %p341_p6 = scmp.ge.s32.totalorder %s488_s14, 1  ;;  %p88_p7 = scmp.eq.s32.totalorder %s87_s20, 0 }
   0xb   : > { %p554_p8 = por %p107_p5, %p106_p3  ;;  %p143_p9 = scmp.lt.s32.totalorder %s488_s14, 3 }
   0xc   : > { %s560_s22 = scalar_select %p88_p7, %s476_s11, %s90_s18  }
   0xd   : > { %p144_p10 = pnand %p341_p6, %p143_p9 }
   0xe   : > { %p171_p11 = scmp.lt.s32.totalorder (!%p144_p10), %s480_s12, 1  ;;  %s167_s3 = sand.u32 (!%p144_p10), 1, %s472_s10  }
   0xf   : > { %147 = sbr.rel (%p144_p10) target bundleno = 401 (0x191), region = 28  ;;  %s342_s4 = sshll.u32 (!%p144_p10), %s167_s3, 3 }
  0x10   : > { %s347_s5 = sshll.u32 (!%p144_p10), %s480_s12, 3  ;;  %s169_s15 = scalar_lea.vmem (!%p144_p10), [#allocation4], %s342_s4 }
  0x11   : > { %s253_s8 = scalar_lea.hbm (!%p144_p10), %s613_s2, %s347_s5  ;;  %s255_s16 = sshll.u32 (!%p144_p10), %s169_s15, 4  ;;  %s256_s16 = int_to_ptr.vmem [resolvable:$true] %s255_s16 }
  0x12   : > { %s257_s18 = sshll.u32 (!%p144_p10), %s253_s8, 4  ;;  %s243_s20 = scalar_lea.sflag (!%p144_p10), [#allocation5], %s167_s3  ;;  %s258_s18 = int_to_ptr.hbm [resolvable:$true] %s257_s18 }
  0x13   : > { %s430_s26 = scalar_lea.hbm (!%p144_p10), %s613_s2, 16 }
  0x14   : > { %vm186_vm0 = vcmask 7168   ;;  %v490_v0 = vmov 0   ;;  %v491_v1 = vmov 0.0   ;;  %s172_s23 = scalar_select %p171_p11, %s480_s12, 1  ;;  %vm200_vm2 = vcmask 261120  }
  0x15   : > { %407 = vset.pattern.permute.xlu0 %v490_v0  ;;  %187 = vst.msk [vmem:[#allocation2] sm:$0xff] %vm186_vm0, %v491_v1  ;;  %408 = vset.pattern.permute.xlu1 %v490_v0  ;;  %v193_v9 = vlaneseq }
  0x16   : > { %188 = vst.msk [vmem:[#allocation3] sm:$0xff] %vm186_vm0, %v491_v1  ;;  %409 = vset.pattern.permute.xlu2 %v490_v0  ;;  %s343_s24 = sshll.u32 %s172_s23, 3  ;;  %s424_s23 = sshra.s32 %s258_s18, 4  ;;  %s425_s23 = int_to_ptr.hbm [resolvable:$true] %s424_s23 }
  0x17   : > { %s180_s27 = scalar_lea.vmem %s612_s1, %s343_s24  ;;  %s174_s30 = scalar_lea.vmem %s611_s0, %s343_s24  ;;  %v194_v10 = vand.u32 127, %v193_v9 }
  0x18   : > { %v190_v2 = vld [vmem:[%s180_s27] sm:$0xff]  ;;  %s426_s12 = scalar_lea.hbm %s425_s23, 8  ;;  %p431_p1 = scmp.lt.s32.totalorder %s425_s23, %s613_s2 }
  0x19   : > { %vm191_vm1 = vcmp.ne.s32.totalorder %v190_v2, 0  ;;  %v189_v7 = vld [vmem:[%s174_s30] sm:$0xff]  ;;  %vm225_vm4 = vcmp.eq.s32.totalorder %v194_v10, 0  ;;  %vm233_vm5 = vcmp.eq.s32.totalorder %v194_v10, 1  ;;  %p427_p12 = scmp.ne.s32.totalorder %s425_s23, %s426_s12  ;;  %p432_p2 = scmp.lt.s32.totalorder %s430_s26, %s426_s12 }
  0x1a   : > { %v192_v3 = vsel %vm191_vm1, %v190_v2, 4294967295  ;;  %v345_v4 = vsel %vm191_vm1, 1.0, %v491_v1  ;;  %v204_v8 = vsel %vm200_vm2, %v189_v7, 0.0 }
  0x1b   : > { %196 = vperm.xlu0 %407, %v192_v3   ;;  %205 = vadd.xlane.f32.xlu1 %v204_v8  ;;  %p428_p13 = pnand %p427_p12, %p547_p4  ;;  %p433_p3 = por %p432_p2, %p431_p1 }
  0x1c   : > { %v214_v22 = vld [vmem:[#allocation2] sm:$0xff] }
  0x1d   : > { %v219_v5 = vld [vmem:[#allocation3] sm:$0xff]  ;;  %p429_p0 = pneg %p428_p13 }
  0x1e   : > { %v220_v6 = vadd.f32 %v345_v4, %v219_v5 }
  0x1f   : > { %p434_p5 = pnand %p433_p3, %p429_p0 }
  0x20   : > { %221 = vst.msk [vmem:[#allocation3] sm:$0xff] %vm186_vm0, %v220_v6 }
  0x27   : > { %v234_v14 = vld [vmem:[#allocation3] sm:$0xff] }
  0x28   : > { %237 = vperm.xlu2 %409, %v234_v14  }
  0x82   : > { %v238_v26 = vpop.permute.xlu2 %237 }
  0x8d   : > { %v197_v11 = vpop.permute.xlu0 %196 }
  0x8e   : > { %vm198_vm3 = vcmp.eq.s32.totalorder %v194_v10, %v197_v11  ;;  %v206_v15 = vpop.xlane.xlu1 %205 }
  0x8f   : > { %v199_v12 = vsel %vm198_vm3, %v189_v7, 0.0 }
  0x90   : > { %v201_v13 = vsel %vm200_vm2, %v199_v12, 0.0 }
  0x91   : > { %202 = vadd.xlane.f32.xlu0 %v201_v13 }
 0x104   : > { %v203_v16 = vpop.xlane.xlu0 %202 }
 0x105   : > { %v207_v17 = vsub.f32 %v206_v15, %v203_v16  ;;  %v210_v20 = vmul.f32 0.9, %v203_v16 }
 0x107   : > { %v208_v18 = vsub.f32 %v207_v17, %v189_v7 }
 0x109   : > { %v209_v19 = vmul.f32 -0.0033333334, %v208_v18 }
 0x10b   : > { %v211_v21 = vsub.f32 %v209_v19, %v210_v20 }
 0x10d   : > { %v215_v23 = vmul.f32 %v345_v4, %v211_v21 }
 0x10f   : > { %v216_v24 = vadd.f32 %v215_v23, %v214_v22 }
 0x111   : > { %218 = vst.msk [vmem:[#allocation2] sm:$0xff] %vm186_vm0, %v216_v24 }
 0x118   : > { %v226_v25 = vld [vmem:[#allocation2] sm:$0xff] }
 0x119   : > { %229 = vperm.xlu1 %408, %v226_v25  }
 0x18b   : > { %v230_v27 = vpop.permute.xlu1 %229 }
 0x18c   : > { %v232_v28 = vsel %vm225_vm4, %v230_v27, 0.0 }
 0x18d   : > { %v240_v29 = vsel %vm233_vm5, %v238_v26, %v232_v28 }
 0x18e   : > { %241 = vst [vmem:[%s169_s15] sm:$0xff] %v240_v29 }
 0x18f   : > { %437 = shalt.err (!%p434_p5)
}
 0x190   : > { %350 = dma.vmem_to_hbm [thread:$0]  (%p547_p4), %s256_s16, 128, %s258_s18, %s243_s20  }
 0x191 PF: > { %p356_p6 = scmp.ge.s32.totalorder %s488_s14, 2  ;;  %s269_s29 = sand.u32 1, %s468_s9  }
 0x192   : > { %s270_s30 = scalar_lea.sflag [#allocation5], %s269_s29 }
 0x193   : > { %p353_p7 = pnand %p356_p6, %p554_p8 }
 0x195   : > { %p354_p9 = pneg %p353_p7 }
 0x197   : > { %463 = dma.done.wait (%p354_p9), %s270_s30, 128  }
 0x198   : > { %465 = vsyncadd (%p354_p9), %s270_s30, 4294967168  ;;  %s15_s14 = sadd.s32 1, %s488_s14   ;;  %s616_s9 = smov %s472_s10 }
 0x199   : > { %p12_p10 = scmp.ge.s32.totalorder %s15_s14, 4   ;;  %s617_s10 = smov %s476_s11 }
 0x19a   : > { %s618_s11 = smov %s560_s22  ;;  %s619_s12 = smov %s484_s13 }
 0x19b   : > { %s620_s13 = smov %s622_s17  ;;  %14 = sbr.rel (!%p12_p10) target bundleno = 4 (0x4), region = 74 }
 0x1a0   :  { %276 = vsyncpa [#allocation5], 1 }
 0x1a1   :  { %278 = vsyncpa [#allocation5 + $0x1], 1 }

</bundles_post_ra>
